<compile_context>
chip_gen: v7x
topology: tpu7x:2x2x1
jax: 0.10.0
libtpu: 0.0.40
codegen_flags: <defaults>
</compile_context>

<pallas_src>
import numpy as np
import jax
import jax.numpy as jnp
from jax.experimental import pallas as pl
from jax.experimental.pallas import tpu as pltpu


# ----------------------------- module helpers -------------------------------

def tau_decompose(taus):
    mlos, mhis, l_begin, l_end = [], [], [], []
    for l, t in enumerate(taus):
        l_begin.append(0 if not mhis else mhis[-1])
        for _ in range(t):
            mlos.append(0 if not mhis else mhis[-1])
            mhis.append(mlos[-1] + 2 * l + 1)
        l_end.append(0 if not mhis else mhis[-1])
    return mlos, mhis, l_begin, l_end


def _trim_trailing_zeros(taus):
    t = list(taus)
    while t and t[-1] == 0:
        t.pop()
    return t


# ------------------------------- Pallas kernel ------------------------------

def make_kernel(taus, l_begin, l_end, l_use, eps, param_offsets, tau0):
    """Build the kernel body; structure is static / fully unrolled over (l, t)."""

    def kernel(params_ref, x_ref, out_ref):
        # params_ref : [P]          packed f32 weights/biases in SMEM (scalar reads)
        # x_ref      : [2, CH, TN]  re/im planes, channels on sublanes, lanes dense
        # out_ref    : [2, CH, TN]

        # l=0 feature rows feed every gate; load once as [1, TN] lane-dense rows.
        x0_re = [x_ref[0, k:k + 1, :] for k in range(tau0)]
        x0_im = [x_ref[1, k:k + 1, :] for k in range(tau0)]

        for l, tau_l in enumerate(taus):
            if tau_l == 0:
                continue
            lo, hi = l_begin[l], l_end[l]

            if l == 0 or not l_use[l]:
                # passthrough channels: full-lane-width copies
                out_ref[0, lo:hi, :] = x_ref[0, lo:hi, :]
                out_ref[1, lo:hi, :] = x_ref[1, lo:hi, :]
                continue

            m = 2 * l + 1
            wre_off, wim_off, bre_off, bim_off = param_offsets[l]

            for t in range(tau_l):
                # Complex gate:
                #   activ_re = (Wre re(x0)+bre) - (Wim im(x0)+bim)
                #   activ_im = (Wim re(x0)+bim) + (Wre im(x0)+bre)
                # computed as scalar-broadcast VPU FMAs on lane-dense rows.
                ar = None
                ai = None
                for k in range(tau0):
                    wre = params_ref[wre_off + t * tau0 + k]
                    wim = params_ref[wim_off + t * tau0 + k]
                    tr = wre * x0_re[k] - wim * x0_im[k]
                    ti = wim * x0_re[k] + wre * x0_im[k]
                    ar = tr if ar is None else ar + tr
                    ai = ti if ai is None else ai + ti
                bre_t = params_ref[bre_off + t]
                bim_t = params_ref[bim_off + t]
                ar = (ar + bre_t) - bim_t          # [1, TN]
                ai = (ai + bre_t) + bim_t          # [1, TN]

                r0 = lo + t * m
                xr = x_ref[0, r0:r0 + m, :]        # [m, TN]
                xi = x_ref[1, r0:r0 + m, :]

                yr = xr * ar - xi * ai
                yi = xi * ar + xr * ai

                # Scale-invariant normalization: divide by eps + (sum(y^2))^(1/4)
                # (matches PyTorch: eps + sqrt(sqrt(sum over (m, re/im) of y^2)))
                ssq = jnp.sum(yr * yr + yi * yi, axis=0, keepdims=True)   # [1, TN]
                inv = pl.reciprocal(eps + jnp.sqrt(jnp.sqrt(ssq)), approx=True)

                out_ref[0, r0:r0 + m, :] = yr * inv
                out_ref[1, r0:r0 + m, :] = yi * inv

    return kernel


# --------------------------------- wrapper ----------------------------------

class ScaleInvariantSHActivationPallas:
    def __init__(self, taus, l_use_list, eps, key):
        self.taus = _trim_trailing_zeros(list(taus))
        _, _, self.l_begin, self.l_end = tau_decompose(self.taus)
        self.l_use = [0 for _ in range(len(self.taus))]
        for l in l_use_list:
            assert 0 < l < len(self.taus)
            self.l_use[l] = 1
        assert self.l_use[0] == 0
        self.eps = float(eps)
        self.CH = self.l_end[-1]
        self.tau0 = self.taus[0]

        self.active_ls = [l for l in range(1, len(self.taus))
                          if self.taus[l] > 0 and self.l_use[l]]

        # deterministic synthetic parameters (shapes match nn.Linear(tau0, tau_l)),
        # packed into ONE flat f32 array read as scalars from SMEM.
        self.weights = {}
        self.param_offsets = {}
        pieces = []
        off = 0
        tau0 = self.tau0
        for l in self.active_ls:
            tau_l = self.taus[l]
            key, k1, k2, k3, k4 = jax.random.split(key, 5)
            Wre = jax.random.normal(k1, (tau_l, tau0), jnp.float32) * 0.5
            Wim = jax.random.normal(k2, (tau_l, tau0), jnp.float32) * 0.5
            bre = jax.random.normal(k3, (tau_l,), jnp.float32) * 0.1
            bim = jax.random.normal(k4, (tau_l,), jnp.float32) * 0.1
            self.weights[l] = (Wre, Wim, bre, bim)
            wre_off = off; off += tau_l * tau0
            wim_off = off; off += tau_l * tau0
            bre_off = off; off += tau_l
            bim_off = off; off += tau_l
            self.param_offsets[l] = (wre_off, wim_off, bre_off, bim_off)
            pieces += [Wre.reshape(-1), Wim.reshape(-1), bre, bim]
        self.params_packed = (jnp.concatenate(pieces) if pieces
                              else jnp.zeros((1,), jnp.float32))

        self._kernel = make_kernel(self.taus, self.l_begin, self.l_end, self.l_use,
                                   self.eps, self.param_offsets, tau0)

    def __call__(self, x):
        # x: [B, CH, T, F, 2]   (PyTorch module's input convention)
        B, CH, T, F_, RI = x.shape
        assert RI == 2 and CH == self.CH
        N = B * T * F_

        # single transpose into the kernel-native channels-major layout [2, CH, N]
        x2 = jnp.transpose(x, (4, 1, 0, 2, 3)).reshape(2, CH, N)

        # Lane tile: up to 2048 lanes (multiple of 128) so each grid step moves
        # enough bytes to amortize the ~0.35 us per-step overhead; shrink for
        # tiny inputs.  Per-block VMEM (in+out, double-buffered) =
        # 4 * 2*CH*TN*4 B  (~0.9 MiB at CH=13, TN=2048) -- far under the
        # scoped VMEM default on v5e/v6e/v7x.
        TN = 2048
        if N < TN:
            TN = max(128, -(-N // 128) * 128)
        Npad = -(-N // TN) * TN
        if Npad != N:
            x2 = jnp.pad(x2, ((0, 0), (0, 0), (0, Npad - N)))

        grid = (Npad // TN,)
        blk = pl.BlockSpec((2, CH, TN), lambda i: (0, 0, i))

        out = pl.pallas_call(
            self._kernel,
            grid=grid,
            in_specs=[pl.BlockSpec(memory_space=pltpu.MemorySpace.SMEM),  # packed params
                      blk],
            out_specs=blk,
            out_shape=jax.ShapeDtypeStruct((2, CH, Npad), jnp.float32),
            compiler_params=pltpu.CompilerParams(
                dimension_semantics=("parallel",)),
        )(self.params_packed, x2)

        # single transpose back to [B, CH, T, F, 2]
        out = out[:, :, :N].reshape(2, CH, B, T, F_)
        return jnp.transpose(out, (2, 1, 3, 4, 0))


# ------------------------------ pure-JAX reference --------------------------

def reference_forward(module, x):
    B, CH, T, F_, _ = x.shape
    N = B * T * F_
    xp = jnp.transpose(x, (0, 2, 3, 1, 4)).reshape(N, CH, 2)
    x0 = xp[:, module.l_begin[0]:module.l_end[0]]
    rex0, imx0 = x0[..., 0], x0[..., 1]
    ret = []
    for l, tau in enumerate(module.taus):
        if l == 0:
            ret.append(x0)
        elif tau:
            xl = xp[:, module.l_begin[l]:module.l_end[l]]
            if module.l_use[l]:
                Wre, Wim, bre, bim = module.weights[l]
                m = 2 * l + 1
                xl = xl.reshape(N, tau, m, 2)
                activ_re = ((rex0 @ Wre.T + bre) - (imx0 @ Wim.T + bim))[:, :, None]
                activ_im = ((rex0 @ Wim.T + bim) + (imx0 @ Wre.T + bre))[:, :, None]
                xl_re = xl[..., 0] * activ_re - xl[..., 1] * activ_im
                xl_im = xl[..., 1] * activ_re + xl[..., 0] * activ_im
                xl = jnp.stack([xl_re, xl_im], axis=-1)
                norm = jnp.sqrt(jnp.sum(xl * xl, axis=(2, 3)))
                xl = xl / (module.eps + jnp.sqrt(norm)[:, :, None, None])
                xl = xl.reshape(N, tau * m, 2)
            ret.append(xl)
    ret = jnp.concatenate(ret, axis=1)
    return jnp.transpose(ret.reshape(B, T, F_, CH, 2), (0, 3, 1, 2, 4))


# ----------------------------------- main ------------------------------------

if __name__ == "__main__":
    taus = [2, 2, 1]             # tau_0=2, tau_1=2, tau_2=1 -> CH = 2 + 6 + 5 = 13
    l_use_list = [1, 2]
    eps = 1e-3

    B, T, F_ = 2, 4, 8
    CH = sum(t * (2 * l + 1) for l, t in enumerate(taus))

    key = jax.random.PRNGKey(0)
    key, kx, kp = jax.random.split(key, 3)
    x = jax.random.normal(kx, (B, CH, T, F_, 2), jnp.float32)

    module = ScaleInvariantSHActivationPallas(taus, l_use_list, eps, kp)

    out = jax.block_until_ready(module(x))
    assert out.shape == x.shape and out.dtype == jnp.float32

    ref = jax.block_until_ready(reference_forward(module, x))
    np.testing.assert_allclose(np.asarray(out), np.asarray(ref), rtol=2e-2, atol=2e-2)

    print("KERNEL_OK")
</pallas_src>

<mosaic_0001>
module attributes {stable_mosaic.version = 11 : i64} {
  func.func @kernel(%arg0: i32, %arg1: memref<18xf32, #tpu.memory_space<smem>>, %arg2: memref<2x13x128xf32, #tpu.memory_space<vmem>>, %arg3: memref<2x13x128xf32, #tpu.memory_space<vmem>>) attributes {dimension_semantics = [#tpu.dimension_semantics<parallel>], iteration_bounds = array<i64: 1>, scalar_prefetch = 0 : i64, scratch_operands = 0 : i64, tpu.core_type = #tpu.core_type<tc>, window_params = [{transform_indices = @transform_0, window_bounds = array<i64: 18>}, {transform_indices = @transform_1, window_bounds = array<i64: 2, 13, 128>}, {transform_indices = @transform_2, window_bounds = array<i64: 2, 13, 128>}]} {
    %c0 = arith.constant 0 : index
    %c0_0 = arith.constant 0 : index
    %c0_1 = arith.constant 0 : index
    %0 = vector.load %arg2[%c0, %c0_0, %c0_1] : memref<2x13x128xf32, #tpu.memory_space<vmem>>, vector<1x1x128xf32>
    %1 = vector.shape_cast %0 : vector<1x1x128xf32> to vector<1x128xf32>
    %c0_2 = arith.constant 0 : index
    %c1 = arith.constant 1 : index
    %c0_3 = arith.constant 0 : index
    %2 = vector.load %arg2[%c0_2, %c1, %c0_3] : memref<2x13x128xf32, #tpu.memory_space<vmem>>, vector<1x1x128xf32>
    %3 = vector.shape_cast %2 : vector<1x1x128xf32> to vector<1x128xf32>
    %c1_4 = arith.constant 1 : index
    %c0_5 = arith.constant 0 : index
    %c0_6 = arith.constant 0 : index
    %4 = vector.load %arg2[%c1_4, %c0_5, %c0_6] : memref<2x13x128xf32, #tpu.memory_space<vmem>>, vector<1x1x128xf32>
    %5 = vector.shape_cast %4 : vector<1x1x128xf32> to vector<1x128xf32>
    %c1_7 = arith.constant 1 : index
    %c1_8 = arith.constant 1 : index
    %c0_9 = arith.constant 0 : index
    %6 = vector.load %arg2[%c1_7, %c1_8, %c0_9] : memref<2x13x128xf32, #tpu.memory_space<vmem>>, vector<1x1x128xf32>
    %7 = vector.shape_cast %6 : vector<1x1x128xf32> to vector<1x128xf32>
    %c0_10 = arith.constant 0 : index
    %c0_11 = arith.constant 0 : index
    %c0_12 = arith.constant 0 : index
    %8 = vector.load %arg2[%c0_10, %c0_11, %c0_12] : memref<2x13x128xf32, #tpu.memory_space<vmem>>, vector<1x2x128xf32>
    %9 = vector.shape_cast %8 : vector<1x2x128xf32> to vector<2x128xf32>
    %c0_13 = arith.constant 0 : index
    %c0_14 = arith.constant 0 : index
    %c0_15 = arith.constant 0 : index
    %10 = vector.load %arg3[%c0_13, %c0_14, %c0_15] : memref<2x13x128xf32, #tpu.memory_space<vmem>>, vector<1x2x128xf32>
    %11 = vector.shape_cast %10 : vector<1x2x128xf32> to vector<2x128xf32>
    %12 = vector.shape_cast %9 : vector<2x128xf32> to vector<1x2x128xf32>
    tpu.vector_store %arg3[%c0_13, %c0_14, %c0_15], %12 {strides = array<i32>} : memref<2x13x128xf32, #tpu.memory_space<vmem>>, vector<1x2x128xf32>,
    %c1_16 = arith.constant 1 : index
    %c0_17 = arith.constant 0 : index
    %c0_18 = arith.constant 0 : index
    %13 = vector.load %arg2[%c1_16, %c0_17, %c0_18] : memref<2x13x128xf32, #tpu.memory_space<vmem>>, vector<1x2x128xf32>
    %14 = vector.shape_cast %13 : vector<1x2x128xf32> to vector<2x128xf32>
    %c1_19 = arith.constant 1 : index
    %c0_20 = arith.constant 0 : index
    %c0_21 = arith.constant 0 : index
    %15 = vector.load %arg3[%c1_19, %c0_20, %c0_21] : memref<2x13x128xf32, #tpu.memory_space<vmem>>, vector<1x2x128xf32>
    %16 = vector.shape_cast %15 : vector<1x2x128xf32> to vector<2x128xf32>
    %17 = vector.shape_cast %14 : vector<2x128xf32> to vector<1x2x128xf32>
    tpu.vector_store %arg3[%c1_19, %c0_20, %c0_21], %17 {strides = array<i32>} : memref<2x13x128xf32, #tpu.memory_space<vmem>>, vector<1x2x128xf32>,
    %c0_22 = arith.constant 0 : index
    %18 = memref.load %arg1[%c0_22] : memref<18xf32, #tpu.memory_space<smem>>
    %c4 = arith.constant 4 : index
    %19 = memref.load %arg1[%c4] : memref<18xf32, #tpu.memory_space<smem>>
    %20 = vector.broadcast %18 : f32 to vector<1x128xf32>
    %21 = arith.mulf %20, %1 : vector<1x128xf32>
    %22 = vector.broadcast %19 : f32 to vector<1x128xf32>
    %23 = arith.mulf %22, %5 : vector<1x128xf32>
    %24 = arith.subf %21, %23 : vector<1x128xf32>
    %25 = vector.broadcast %19 : f32 to vector<1x128xf32>
    %26 = arith.mulf %25, %1 : vector<1x128xf32>
    %27 = vector.broadcast %18 : f32 to vector<1x128xf32>
    %28 = arith.mulf %27, %5 : vector<1x128xf32>
    %29 = arith.addf %26, %28 : vector<1x128xf32>
    %c1_23 = arith.constant 1 : index
    %30 = memref.load %arg1[%c1_23] : memref<18xf32, #tpu.memory_space<smem>>
    %c5 = arith.constant 5 : index
    %31 = memref.load %arg1[%c5] : memref<18xf32, #tpu.memory_space<smem>>
    %32 = vector.broadcast %30 : f32 to vector<1x128xf32>
    %33 = arith.mulf %32, %3 : vector<1x128xf32>
    %34 = vector.broadcast %31 : f32 to vector<1x128xf32>
    %35 = arith.mulf %34, %7 : vector<1x128xf32>
    %36 = arith.subf %33, %35 : vector<1x128xf32>
    %37 = vector.broadcast %31 : f32 to vector<1x128xf32>
    %38 = arith.mulf %37, %3 : vector<1x128xf32>
    %39 = vector.broadcast %30 : f32 to vector<1x128xf32>
    %40 = arith.mulf %39, %7 : vector<1x128xf32>
    %41 = arith.addf %38, %40 : vector<1x128xf32>
    %42 = arith.addf %24, %36 : vector<1x128xf32>
    %43 = arith.addf %29, %41 : vector<1x128xf32>
    %c8 = arith.constant 8 : index
    %44 = memref.load %arg1[%c8] : memref<18xf32, #tpu.memory_space<smem>>
    %c10 = arith.constant 10 : index
    %45 = memref.load %arg1[%c10] : memref<18xf32, #tpu.memory_space<smem>>
    %46 = vector.broadcast %44 : f32 to vector<1x128xf32>
    %47 = arith.addf %42, %46 : vector<1x128xf32>
    %48 = vector.broadcast %45 : f32 to vector<1x128xf32>
    %49 = arith.subf %47, %48 : vector<1x128xf32>
    %50 = vector.broadcast %44 : f32 to vector<1x128xf32>
    %51 = arith.addf %43, %50 : vector<1x128xf32>
    %52 = vector.broadcast %45 : f32 to vector<1x128xf32>
    %53 = arith.addf %51, %52 : vector<1x128xf32>
    %c0_24 = arith.constant 0 : index
    %c2 = arith.constant 2 : index
    %c0_25 = arith.constant 0 : index
    %54 = vector.load %arg2[%c0_24, %c2, %c0_25] : memref<2x13x128xf32, #tpu.memory_space<vmem>>, vector<1x3x128xf32>
    %55 = vector.shape_cast %54 : vector<1x3x128xf32> to vector<3x128xf32>
    %c1_26 = arith.constant 1 : index
    %c2_27 = arith.constant 2 : index
    %c0_28 = arith.constant 0 : index
    %56 = vector.load %arg2[%c1_26, %c2_27, %c0_28] : memref<2x13x128xf32, #tpu.memory_space<vmem>>, vector<1x3x128xf32>
    %57 = vector.shape_cast %56 : vector<1x3x128xf32> to vector<3x128xf32>
    %58 = vector.broadcast %49 : vector<1x128xf32> to vector<3x128xf32>
    %59 = arith.mulf %55, %58 : vector<3x128xf32>
    %60 = vector.broadcast %53 : vector<1x128xf32> to vector<3x128xf32>
    %61 = arith.mulf %57, %60 : vector<3x128xf32>
    %62 = arith.subf %59, %61 : vector<3x128xf32>
    %63 = vector.broadcast %49 : vector<1x128xf32> to vector<3x128xf32>
    %64 = arith.mulf %57, %63 : vector<3x128xf32>
    %65 = vector.broadcast %53 : vector<1x128xf32> to vector<3x128xf32>
    %66 = arith.mulf %55, %65 : vector<3x128xf32>
    %67 = arith.addf %64, %66 : vector<3x128xf32>
    %68 = arith.mulf %62, %62 : vector<3x128xf32>
    %69 = arith.mulf %67, %67 : vector<3x128xf32>
    %70 = arith.addf %68, %69 : vector<3x128xf32>
    %cst = arith.constant dense<0.000000e+00> : vector<128xf32>
    %71 = vector.multi_reduction <add>, %70, %cst [0] : vector<3x128xf32> to vector<128xf32>
    %72 = vector.shape_cast %71 : vector<128xf32> to vector<1x128xf32>
    %73 = math.sqrt %72 : vector<1x128xf32>
    %74 = math.sqrt %73 : vector<1x128xf32>
    %cst_29 = arith.constant 1.000000e-03 : f32
    %75 = vector.broadcast %cst_29 : f32 to vector<1x128xf32>
    %76 = arith.addf %75, %74 : vector<1x128xf32>
    %77 = tpu.reciprocal %76 {approx = true} : vector<1x128xf32> -> vector<1x128xf32>
    %78 = vector.broadcast %77 : vector<1x128xf32> to vector<3x128xf32>
    %79 = arith.mulf %62, %78 : vector<3x128xf32>
    %c0_30 = arith.constant 0 : index
    %c2_31 = arith.constant 2 : index
    %c0_32 = arith.constant 0 : index
    %80 = vector.load %arg3[%c0_30, %c2_31, %c0_32] : memref<2x13x128xf32, #tpu.memory_space<vmem>>, vector<1x3x128xf32>
    %81 = vector.shape_cast %80 : vector<1x3x128xf32> to vector<3x128xf32>
    %82 = vector.shape_cast %79 : vector<3x128xf32> to vector<1x3x128xf32>
    tpu.vector_store %arg3[%c0_30, %c2_31, %c0_32], %82 {strides = array<i32>} : memref<2x13x128xf32, #tpu.memory_space<vmem>>, vector<1x3x128xf32>,
    %83 = vector.broadcast %77 : vector<1x128xf32> to vector<3x128xf32>
    %84 = arith.mulf %67, %83 : vector<3x128xf32>
    %c1_33 = arith.constant 1 : index
    %c2_34 = arith.constant 2 : index
    %c0_35 = arith.constant 0 : index
    %85 = vector.load %arg3[%c1_33, %c2_34, %c0_35] : memref<2x13x128xf32, #tpu.memory_space<vmem>>, vector<1x3x128xf32>
    %86 = vector.shape_cast %85 : vector<1x3x128xf32> to vector<3x128xf32>
    %87 = vector.shape_cast %84 : vector<3x128xf32> to vector<1x3x128xf32>
    tpu.vector_store %arg3[%c1_33, %c2_34, %c0_35], %87 {strides = array<i32>} : memref<2x13x128xf32, #tpu.memory_space<vmem>>, vector<1x3x128xf32>,
    %c2_36 = arith.constant 2 : index
    %88 = memref.load %arg1[%c2_36] : memref<18xf32, #tpu.memory_space<smem>>
    %c6 = arith.constant 6 : index
    %89 = memref.load %arg1[%c6] : memref<18xf32, #tpu.memory_space<smem>>
    %90 = vector.broadcast %88 : f32 to vector<1x128xf32>
    %91 = arith.mulf %90, %1 : vector<1x128xf32>
    %92 = vector.broadcast %89 : f32 to vector<1x128xf32>
    %93 = arith.mulf %92, %5 : vector<1x128xf32>
    %94 = arith.subf %91, %93 : vector<1x128xf32>
    %95 = vector.broadcast %89 : f32 to vector<1x128xf32>
    %96 = arith.mulf %95, %1 : vector<1x128xf32>
    %97 = vector.broadcast %88 : f32 to vector<1x128xf32>
    %98 = arith.mulf %97, %5 : vector<1x128xf32>
    %99 = arith.addf %96, %98 : vector<1x128xf32>
    %c3 = arith.constant 3 : index
    %100 = memref.load %arg1[%c3] : memref<18xf32, #tpu.memory_space<smem>>
    %c7 = arith.constant 7 : index
    %101 = memref.load %arg1[%c7] : memref<18xf32, #tpu.memory_space<smem>>
    %102 = vector.broadcast %100 : f32 to vector<1x128xf32>
    %103 = arith.mulf %102, %3 : vector<1x128xf32>
    %104 = vector.broadcast %101 : f32 to vector<1x128xf32>
    %105 = arith.mulf %104, %7 : vector<1x128xf32>
    %106 = arith.subf %103, %105 : vector<1x128xf32>
    %107 = vector.broadcast %101 : f32 to vector<1x128xf32>
    %108 = arith.mulf %107, %3 : vector<1x128xf32>
    %109 = vector.broadcast %100 : f32 to vector<1x128xf32>
    %110 = arith.mulf %109, %7 : vector<1x128xf32>
    %111 = arith.addf %108, %110 : vector<1x128xf32>
    %112 = arith.addf %94, %106 : vector<1x128xf32>
    %113 = arith.addf %99, %111 : vector<1x128xf32>
    %c9 = arith.constant 9 : index
    %114 = memref.load %arg1[%c9] : memref<18xf32, #tpu.memory_space<smem>>
    %c11 = arith.constant 11 : index
    %115 = memref.load %arg1[%c11] : memref<18xf32, #tpu.memory_space<smem>>
    %116 = vector.broadcast %114 : f32 to vector<1x128xf32>
    %117 = arith.addf %112, %116 : vector<1x128xf32>
    %118 = vector.broadcast %115 : f32 to vector<1x128xf32>
    %119 = arith.subf %117, %118 : vector<1x128xf32>
    %120 = vector.broadcast %114 : f32 to vector<1x128xf32>
    %121 = arith.addf %113, %120 : vector<1x128xf32>
    %122 = vector.broadcast %115 : f32 to vector<1x128xf32>
    %123 = arith.addf %121, %122 : vector<1x128xf32>
    %c0_37 = arith.constant 0 : index
    %c5_38 = arith.constant 5 : index
    %c0_39 = arith.constant 0 : index
    %124 = vector.load %arg2[%c0_37, %c5_38, %c0_39] : memref<2x13x128xf32, #tpu.memory_space<vmem>>, vector<1x3x128xf32>
    %125 = vector.shape_cast %124 : vector<1x3x128xf32> to vector<3x128xf32>
    %c1_40 = arith.constant 1 : index
    %c5_41 = arith.constant 5 : index
    %c0_42 = arith.constant 0 : index
    %126 = vector.load %arg2[%c1_40, %c5_41, %c0_42] : memref<2x13x128xf32, #tpu.memory_space<vmem>>, vector<1x3x128xf32>
    %127 = vector.shape_cast %126 : vector<1x3x128xf32> to vector<3x128xf32>
    %128 = vector.broadcast %119 : vector<1x128xf32> to vector<3x128xf32>
    %129 = arith.mulf %125, %128 : vector<3x128xf32>
    %130 = vector.broadcast %123 : vector<1x128xf32> to vector<3x128xf32>
    %131 = arith.mulf %127, %130 : vector<3x128xf32>
    %132 = arith.subf %129, %131 : vector<3x128xf32>
    %133 = vector.broadcast %119 : vector<1x128xf32> to vector<3x128xf32>
    %134 = arith.mulf %127, %133 : vector<3x128xf32>
    %135 = vector.broadcast %123 : vector<1x128xf32> to vector<3x128xf32>
    %136 = arith.mulf %125, %135 : vector<3x128xf32>
    %137 = arith.addf %134, %136 : vector<3x128xf32>
    %138 = arith.mulf %132, %132 : vector<3x128xf32>
    %139 = arith.mulf %137, %137 : vector<3x128xf32>
    %140 = arith.addf %138, %139 : vector<3x128xf32>
    %cst_43 = arith.constant dense<0.000000e+00> : vector<128xf32>
    %141 = vector.multi_reduction <add>, %140, %cst_43 [0] : vector<3x128xf32> to vector<128xf32>
    %142 = vector.shape_cast %141 : vector<128xf32> to vector<1x128xf32>
    %143 = math.sqrt %142 : vector<1x128xf32>
    %144 = math.sqrt %143 : vector<1x128xf32>
    %cst_44 = arith.constant 1.000000e-03 : f32
    %145 = vector.broadcast %cst_44 : f32 to vector<1x128xf32>
    %146 = arith.addf %145, %144 : vector<1x128xf32>
    %147 = tpu.reciprocal %146 {approx = true} : vector<1x128xf32> -> vector<1x128xf32>
    %148 = vector.broadcast %147 : vector<1x128xf32> to vector<3x128xf32>
    %149 = arith.mulf %132, %148 : vector<3x128xf32>
    %c0_45 = arith.constant 0 : index
    %c5_46 = arith.constant 5 : index
    %c0_47 = arith.constant 0 : index
    %150 = vector.load %arg3[%c0_45, %c5_46, %c0_47] : memref<2x13x128xf32, #tpu.memory_space<vmem>>, vector<1x3x128xf32>
    %151 = vector.shape_cast %150 : vector<1x3x128xf32> to vector<3x128xf32>
    %152 = vector.shape_cast %149 : vector<3x128xf32> to vector<1x3x128xf32>
    tpu.vector_store %arg3[%c0_45, %c5_46, %c0_47], %152 {strides = array<i32>} : memref<2x13x128xf32, #tpu.memory_space<vmem>>, vector<1x3x128xf32>,
    %153 = vector.broadcast %147 : vector<1x128xf32> to vector<3x128xf32>
    %154 = arith.mulf %137, %153 : vector<3x128xf32>
    %c1_48 = arith.constant 1 : index
    %c5_49 = arith.constant 5 : index
    %c0_50 = arith.constant 0 : index
    %155 = vector.load %arg3[%c1_48, %c5_49, %c0_50] : memref<2x13x128xf32, #tpu.memory_space<vmem>>, vector<1x3x128xf32>
    %156 = vector.shape_cast %155 : vector<1x3x128xf32> to vector<3x128xf32>
    %157 = vector.shape_cast %154 : vector<3x128xf32> to vector<1x3x128xf32>
    tpu.vector_store %arg3[%c1_48, %c5_49, %c0_50], %157 {strides = array<i32>} : memref<2x13x128xf32, #tpu.memory_space<vmem>>, vector<1x3x128xf32>,
    %c12 = arith.constant 12 : index
    %158 = memref.load %arg1[%c12] : memref<18xf32, #tpu.memory_space<smem>>
    %c14 = arith.constant 14 : index
    %159 = memref.load %arg1[%c14] : memref<18xf32, #tpu.memory_space<smem>>
    %160 = vector.broadcast %158 : f32 to vector<1x128xf32>
    %161 = arith.mulf %160, %1 : vector<1x128xf32>
    %162 = vector.broadcast %159 : f32 to vector<1x128xf32>
    %163 = arith.mulf %162, %5 : vector<1x128xf32>
    %164 = arith.subf %161, %163 : vector<1x128xf32>
    %165 = vector.broadcast %159 : f32 to vector<1x128xf32>
    %166 = arith.mulf %165, %1 : vector<1x128xf32>
    %167 = vector.broadcast %158 : f32 to vector<1x128xf32>
    %168 = arith.mulf %167, %5 : vector<1x128xf32>
    %169 = arith.addf %166, %168 : vector<1x128xf32>
    %c13 = arith.constant 13 : index
    %170 = memref.load %arg1[%c13] : memref<18xf32, #tpu.memory_space<smem>>
    %c15 = arith.constant 15 : index
    %171 = memref.load %arg1[%c15] : memref<18xf32, #tpu.memory_space<smem>>
    %172 = vector.broadcast %170 : f32 to vector<1x128xf32>
    %173 = arith.mulf %172, %3 : vector<1x128xf32>
    %174 = vector.broadcast %171 : f32 to vector<1x128xf32>
    %175 = arith.mulf %174, %7 : vector<1x128xf32>
    %176 = arith.subf %173, %175 : vector<1x128xf32>
    %177 = vector.broadcast %171 : f32 to vector<1x128xf32>
    %178 = arith.mulf %177, %3 : vector<1x128xf32>
    %179 = vector.broadcast %170 : f32 to vector<1x128xf32>
    %180 = arith.mulf %179, %7 : vector<1x128xf32>
    %181 = arith.addf %178, %180 : vector<1x128xf32>
    %182 = arith.addf %164, %176 : vector<1x128xf32>
    %183 = arith.addf %169, %181 : vector<1x128xf32>
    %c16 = arith.constant 16 : index
    %184 = memref.load %arg1[%c16] : memref<18xf32, #tpu.memory_space<smem>>
    %c17 = arith.constant 17 : index
    %185 = memref.load %arg1[%c17] : memref<18xf32, #tpu.memory_space<smem>>
    %186 = vector.broadcast %184 : f32 to vector<1x128xf32>
    %187 = arith.addf %182, %186 : vector<1x128xf32>
    %188 = vector.broadcast %185 : f32 to vector<1x128xf32>
    %189 = arith.subf %187, %188 : vector<1x128xf32>
    %190 = vector.broadcast %184 : f32 to vector<1x128xf32>
    %191 = arith.addf %183, %190 : vector<1x128xf32>
    %192 = vector.broadcast %185 : f32 to vector<1x128xf32>
    %193 = arith.addf %191, %192 : vector<1x128xf32>
    %c0_51 = arith.constant 0 : index
    %c8_52 = arith.constant 8 : index
    %c0_53 = arith.constant 0 : index
    %194 = vector.load %arg2[%c0_51, %c8_52, %c0_53] : memref<2x13x128xf32, #tpu.memory_space<vmem>>, vector<1x5x128xf32>
    %195 = vector.shape_cast %194 : vector<1x5x128xf32> to vector<5x128xf32>
    %c1_54 = arith.constant 1 : index
    %c8_55 = arith.constant 8 : index
    %c0_56 = arith.constant 0 : index
    %196 = vector.load %arg2[%c1_54, %c8_55, %c0_56] : memref<2x13x128xf32, #tpu.memory_space<vmem>>, vector<1x5x128xf32>
    %197 = vector.shape_cast %196 : vector<1x5x128xf32> to vector<5x128xf32>
    %198 = vector.broadcast %189 : vector<1x128xf32> to vector<5x128xf32>
    %199 = arith.mulf %195, %198 : vector<5x128xf32>
    %200 = vector.broadcast %193 : vector<1x128xf32> to vector<5x128xf32>
    %201 = arith.mulf %197, %200 : vector<5x128xf32>
    %202 = arith.subf %199, %201 : vector<5x128xf32>
    %203 = vector.broadcast %189 : vector<1x128xf32> to vector<5x128xf32>
    %204 = arith.mulf %197, %203 : vector<5x128xf32>
    %205 = vector.broadcast %193 : vector<1x128xf32> to vector<5x128xf32>
    %206 = arith.mulf %195, %205 : vector<5x128xf32>
    %207 = arith.addf %204, %206 : vector<5x128xf32>
    %208 = arith.mulf %202, %202 : vector<5x128xf32>
    %209 = arith.mulf %207, %207 : vector<5x128xf32>
    %210 = arith.addf %208, %209 : vector<5x128xf32>
    %cst_57 = arith.constant dense<0.000000e+00> : vector<128xf32>
    %211 = vector.multi_reduction <add>, %210, %cst_57 [0] : vector<5x128xf32> to vector<128xf32>
    %212 = vector.shape_cast %211 : vector<128xf32> to vector<1x128xf32>
    %213 = math.sqrt %212 : vector<1x128xf32>
    %214 = math.sqrt %213 : vector<1x128xf32>
    %cst_58 = arith.constant 1.000000e-03 : f32
    %215 = vector.broadcast %cst_58 : f32 to vector<1x128xf32>
    %216 = arith.addf %215, %214 : vector<1x128xf32>
    %217 = tpu.reciprocal %216 {approx = true} : vector<1x128xf32> -> vector<1x128xf32>
    %218 = vector.broadcast %217 : vector<1x128xf32> to vector<5x128xf32>
    %219 = arith.mulf %202, %218 : vector<5x128xf32>
    %c0_59 = arith.constant 0 : index
    %c8_60 = arith.constant 8 : index
    %c0_61 = arith.constant 0 : index
    %220 = vector.load %arg3[%c0_59, %c8_60, %c0_61] : memref<2x13x128xf32, #tpu.memory_space<vmem>>, vector<1x5x128xf32>
    %221 = vector.shape_cast %220 : vector<1x5x128xf32> to vector<5x128xf32>
    %222 = vector.shape_cast %219 : vector<5x128xf32> to vector<1x5x128xf32>
    tpu.vector_store %arg3[%c0_59, %c8_60, %c0_61], %222 {strides = array<i32>} : memref<2x13x128xf32, #tpu.memory_space<vmem>>, vector<1x5x128xf32>,
    %223 = vector.broadcast %217 : vector<1x128xf32> to vector<5x128xf32>
    %224 = arith.mulf %207, %223 : vector<5x128xf32>
    %c1_62 = arith.constant 1 : index
    %c8_63 = arith.constant 8 : index
    %c0_64 = arith.constant 0 : index
    %225 = vector.load %arg3[%c1_62, %c8_63, %c0_64] : memref<2x13x128xf32, #tpu.memory_space<vmem>>, vector<1x5x128xf32>
    %226 = vector.shape_cast %225 : vector<1x5x128xf32> to vector<5x128xf32>
    %227 = vector.shape_cast %224 : vector<5x128xf32> to vector<1x5x128xf32>
    tpu.vector_store %arg3[%c1_62, %c8_63, %c0_64], %227 {strides = array<i32>} : memref<2x13x128xf32, #tpu.memory_space<vmem>>, vector<1x5x128xf32>,
    return
  }
  func.func @transform_0(%arg0: i32) -> i32 {
    %c0_i32 = arith.constant 0 : i32
    %c0_i32_0 = arith.constant 0 : i32
    return %c0_i32 : i32
  }
  func.func @transform_1(%arg0: i32) -> (i32, i32, i32) {
    %c0_i32 = arith.constant 0 : i32
    %c0_i32_0 = arith.constant 0 : i32
    %c0_i32_1 = arith.constant 0 : i32
    return %c0_i32, %c0_i32_0, %arg0 : i32, i32, i32
  }
  func.func @transform_2(%arg0: i32) -> (i32, i32, i32) {
    %c0_i32 = arith.constant 0 : i32
    %c0_i32_0 = arith.constant 0 : i32
    %c0_i32_1 = arith.constant 0 : i32
    return %c0_i32, %c0_i32_0, %arg0 : i32, i32, i32
  }
}

</mosaic_0001>

<bundles_post_ra>
// kernel: tpu_custom_call.1
= control target key start
LH: loop header
LB: loop body
LE: loop exit
PB: predicated region body
PF: predicated region fallthrough
CT: control target
= control target key end

     0   :  { %7 = vsyncpa [#allocation3], 0  ;;  %s525_s0 = inlined_call_operand.vmem [shape: f32[18], index: 0, kind: input, shape index: {}]   ;;  %s526_s1 = inlined_call_operand.vmem [shape: f32[2,13,128], index: 1, kind: input, shape index: {}]   ;;  %s527_s2 = inlined_call_operand.vmem [shape: f32[2,13,128], index: 2, kind: output, shape index: {}]  }
   0x1   :  { %s14_s11 = sshll.u32 %s525_s0, 4  ;;  %s15_s11 = int_to_ptr.vmem [resolvable:$true] %s14_s11 }
   0x2   :  { %s315_s12 = scalar_lea.vmem %s15_s11, 16  ;;  %p320_p1 = scmp.lt.s32.totalorder %s15_s11, %s15_s11 }
   0x3   :  { %p316_p0 = scmp.ne.s32.totalorder %s15_s11, %s315_s12  ;;  %p321_p2 = scmp.lt.s32.totalorder %s315_s12, %s315_s12 }
   0x5   :  { %p322_p3 = por %p321_p2, %p320_p1 }
   0x7   :  { %p323_p4 = pnand %p322_p3, %p316_p0 }
   0x9   :  { %326 = shalt.err (!%p323_p4)
}
   0xa   :  { %s329_s13 = smov [#allocation2]  }
   0xb   :  { %17 = dma.vmem_to_smem %s15_s11, 16, %s329_s13, [#allocation3]  }
   0xc   :  { %327 = dma.done.wait [#allocation3], 16  }
   0xd   :  { %328 = vsyncadd [#allocation3], 4294967280 }
   0xe   :  { %23 = sfence }
   0xf   :  { %v29_v0 = vld [vmem:[%s526_s1] sm:$0x3]  ;;  %v271_v1 = vld [vmem:[%s526_s1 + $0x10] sm:$0x3]  ;;  %s34_s21 = sld [smem:[#allocation2]]  ;;  %s273_s22 = sld [smem:[#allocation2 + $0x4]]  ;;  %v66_v2 = vlaneseq }
  0x10   :  { %30 = vst [vmem:[%s527_s2] sm:$0x3] %v29_v0  ;;  %272 = vst [vmem:[%s527_s2 + $0x10] sm:$0x3] %v271_v1  ;;  %s360_s23 = sld [smem:[#allocation2 + $0x1]]  ;;  %s275_s24 = sld [smem:[#allocation2 + $0x5]]  ;;  %vm83_vm0 = vcmask 1042432  }
  0x11   :  { %s362_s25 = sld [smem:[#allocation2 + $0x8]]  ;;  %s364_s26 = sld [smem:[#allocation2 + $0xa]]  ;;  %v369_v3 = vld [vmem:[%s526_s1] sm:$0x1]  ;;  %v378_v4 = vld [vmem:[%s526_s1 + $0x10] sm:$0x1] }
  0x12   :  { %s371_s29 = sld [smem:[#allocation2 + $0x2]]  ;;  %s373_s30 = sld [smem:[#allocation2 + $0x6]]  ;;  %v387_v5 = vld [vmem:[%s526_s1 + $0x1] sm:$0x1]  ;;  %v392_v6 = vld [vmem:[%s526_s1 + $0x11] sm:$0x1] }
  0x13   :  { %s380_s5 = sld [smem:[#allocation2 + $0x3]]  ;;  %s382_s6 = sld [smem:[#allocation2 + $0x7]]  ;;  %v67_v9 = vshrl.u32 %v66_v2, 7  ;;  %v64_v55 = vld [vmem:[%s526_s1 + $0x2] sm:$0x7]  ;;  %vm236_vm1 = vcmask 1044480  }
  0x14   :  { %s398_s11 = sld [smem:[#allocation2 + $0x9]]  ;;  %s403_s12 = sld [smem:[#allocation2 + $0xc]]  ;;  %v278_v56 = vld [vmem:[%s526_s1 + $0x12] sm:$0x7] }
  0x15   :  { %v36_v7 = vstv %s34_s21  ;;  %v38_v8 = vstv %s273_s22  ;;  %s405_s13 = sld [smem:[#allocation2 + $0xe]]  ;;  %s413_s14 = sld [smem:[#allocation2 + $0xb]]  ;;  %v429_v43 = vsub.s32 0, %v67_v9 }
  0x16   :  { %v37_v10 = vmul.f32 %v36_v7, %v369_v3  ;;  %v39_v11 = vmul.f32 %v378_v4, %v38_v8  ;;  %v41_v12 = vmul.f32 %v38_v8, %v369_v3  ;;  %v42_v13 = vmul.f32 %v378_v4, %v36_v7  ;;  %s418_s15 = sld [smem:[#allocation2 + $0xd]]  ;;  %s425_s16 = sld [smem:[#allocation2 + $0xf]] }
  0x17   :  { %v46_v14 = vstv %s360_s23  ;;  %v48_v15 = vstv %s275_s24  ;;  %v58_v16 = vstv %s362_s25  ;;  %v60_v17 = vstv %s364_s26  ;;  %s436_s17 = sld [smem:[#allocation2 + $0x10]]  ;;  %s451_s21 = sld [smem:[#allocation2 + $0x11]] }
  0x18   :  { %v40_v18 = vsub.f32 %v37_v10, %v39_v11  ;;  %v43_v19 = vadd.f32 %v42_v13, %v41_v12  ;;  %v47_v20 = vmul.f32 %v46_v14, %v387_v5  ;;  %v49_v21 = vmul.f32 %v392_v6, %v48_v15 }
  0x19   :  { %v51_v22 = vmul.f32 %v48_v15, %v387_v5  ;;  %v52_v23 = vmul.f32 %v392_v6, %v46_v14  ;;  %v113_v24 = vstv %s371_s29  ;;  %v115_v25 = vstv %s373_s30  ;;  %v286_v14 = vld [vmem:[%s526_s1 + $0x15] sm:$0x7] }
  0x1a   :  { %v50_v26 = vsub.f32 %v47_v20, %v49_v21  ;;  %v114_v27 = vmul.f32 %v113_v24, %v369_v3  ;;  %v116_v28 = vmul.f32 %v378_v4, %v115_v25  ;;  %v118_v29 = vmul.f32 %v115_v25, %v369_v3 }
  0x1b   :  { %v53_v30 = vadd.f32 %v52_v23, %v51_v22  ;;  %v119_v31 = vmul.f32 %v378_v4, %v113_v24  ;;  %v123_v32 = vstv %s380_s5  ;;  %v125_v33 = vstv %s382_s6 }
  0x1c   :  { %v54_v34 = vadd.f32 %v50_v26, %v40_v18  ;;  %v117_v35 = vsub.f32 %v114_v27, %v116_v28  ;;  %v124_v36 = vmul.f32 %v123_v32, %v387_v5  ;;  %v126_v37 = vmul.f32 %v392_v6, %v125_v33 }
  0x1d   :  { %v55_v38 = vadd.f32 %v53_v30, %v43_v19  ;;  %v120_v39 = vadd.f32 %v119_v31, %v118_v29  ;;  %v128_v40 = vmul.f32 %v125_v33, %v387_v5  ;;  %v129_v41 = vmul.f32 %v392_v6, %v123_v32 }
  0x1e   :  { %v59_v42 = vadd.f32 %v58_v16, %v54_v34  ;;  %v127_v44 = vsub.f32 %v124_v36, %v126_v37  ;;  %v135_v45 = vstv %s398_s11  ;;  %v189_v48 = vstv %s403_s12 }
  0x1f   :  { %v62_v46 = vadd.f32 %v58_v16, %v55_v38  ;;  %v130_v47 = vadd.f32 %v129_v41, %v128_v40  ;;  %v191_v49 = vstv %s405_s13  ;;  %v190_v52 = vmul.f32 %v189_v48, %v369_v3 }
  0x20   :  { %v61_v50 = vsub.f32 %v59_v42, %v60_v17  ;;  %v131_v51 = vadd.f32 %v127_v44, %v117_v35  ;;  %v192_v53 = vmul.f32 %v378_v4, %v191_v49  ;;  %v137_v58 = vstv %s413_s14 }
  0x21   :  { %v63_v54 = vadd.f32 %v62_v46, %v60_v17  ;;  %v132_v57 = vadd.f32 %v130_v47, %v120_v39  ;;  %v194_v59 = vmul.f32 %v191_v49, %v369_v3  ;;  %v195_v62 = vmul.f32 %v378_v4, %v189_v48  ;;  %v141_v4 = vld [vmem:[%s526_s1 + $0x5] sm:$0x7]  ;;  %v217_v46 = vld [vmem:[%s526_s1 + $0x8] sm:$0x1f]  ;;  %v294_v47 = vld [vmem:[%s526_s1 + $0x18] sm:$0x1f] }
  0x22   :  { %v69_v60 = vrot.slane %v61_v50, %v429_v43  ;;  %v136_v61 = vadd.f32 %v135_v45, %v131_v51  ;;  %v199_v63 = vstv %s418_s15  ;;  %v193_v2 = vsub.f32 %v190_v52, %v192_v53 }
  0x23   :  { %v74_v0 = vrot.slane %v63_v54, %v429_v43  ;;  %v139_v1 = vadd.f32 %v135_v45, %v132_v57  ;;  %v200_v7 = vmul.f32 %v199_v63, %v387_v5  ;;  %v201_v11 = vstv %s425_s16 }
  0x24   :  { %v70_v8 = vmul.f32 %v69_v60, %v64_v55  ;;  %v77_v9 = vmul.f32 %v278_v56, %v69_v60  ;;  %v138_v10 = vsub.f32 %v136_v61, %v137_v58  ;;  %v202_v15 = vmul.f32 %v392_v6, %v201_v11 }
  0x25   :  { %v75_v12 = vmul.f32 %v278_v56, %v74_v0  ;;  %v78_v3 = vmul.f32 %v74_v0, %v64_v55  ;;  %v140_v13 = vadd.f32 %v139_v1, %v137_v58  ;;  %v196_v17 = vadd.f32 %v195_v62, %v194_v59 }
  0x26   :  { %v146_v16 = vrot.slane %v138_v10, %v429_v43  ;;  %v204_v18 = vmul.f32 %v201_v11, %v387_v5  ;;  %v205_v19 = vmul.f32 %v392_v6, %v199_v63  ;;  %v203_v23 = vsub.f32 %v200_v7, %v202_v15 }
  0x27   :  { %v464_v20 = vsub.f32 %v70_v8, %v75_v12  ;;  %v466_v21 = vadd.f32 %v78_v3, %v77_v9  ;;  %v151_v22 = vrot.slane %v140_v13, %v429_v43  ;;  %v211_v27 = vstv %s436_s17 }
  0x28   :  { %v147_v24 = vmul.f32 %v146_v16, %v141_v4  ;;  %v154_v25 = vmul.f32 %v286_v14, %v146_v16  ;;  %v206_v26 = vadd.f32 %v205_v19, %v204_v18  ;;  %v207_v30 = vadd.f32 %v203_v23, %v193_v2 }
  0x29   :  { %v80_v28 = vmul.f32 %v464_v20, %v464_v20  ;;  %v81_v5 = vmul.f32 %v466_v21, %v466_v21  ;;  %v152_v29 = vmul.f32 %v286_v14, %v151_v22  ;;  %v155_v6 = vmul.f32 %v151_v22, %v141_v4 }
  0x2a   :  { %v208_v31 = vadd.f32 %v206_v26, %v196_v17  ;;  %v213_v35 = vstv %s451_s21  ;;  %v212_v36 = vadd.f32 %v211_v27, %v207_v30 }
  0x2b   :  { %v82_v32 = vadd.f32 %v81_v5, %v80_v28  ;;  %v474_v33 = vsub.f32 %v147_v24, %v152_v29  ;;  %v476_v34 = vadd.f32 %v155_v6, %v154_v25 }
  0x2c   :  { %v215_v37 = vadd.f32 %v211_v27, %v208_v31  ;;  %v214_v42 = vsub.f32 %v212_v36, %v213_v35 }
  0x2d   :  { %v84_v38 = vsel %vm83_vm0, %v82_v32, 0.0  ;;  %v157_v39 = vmul.f32 %v474_v33, %v474_v33  ;;  %v158_v40 = vmul.f32 %v476_v34, %v476_v34 }
  0x2e   :  { %v85_v41 = vrot.slane %v84_v38, 4  ;;  %v216_v44 = vadd.f32 %v215_v37, %v213_v35  ;;  %v222_v49 = vrot.slane %v214_v42, %v429_v43 }
  0x2f   :  { %v159_v45 = vadd.f32 %v158_v40, %v157_v39 }
  0x30   :  { %v86_v48 = vadd.f32 %v85_v41, %v84_v38  ;;  %v227_v50 = vrot.slane %v216_v44, %v429_v43  ;;  %v223_v54 = vmul.f32 %v222_v49, %v217_v46  ;;  %v230_v56 = vmul.f32 %v294_v47, %v222_v49 }
  0x31   :  { %v160_v51 = vsel %vm83_vm0, %v159_v45, 0.0 }
  0x32   :  { %v87_v52 = vrot.slane %v86_v48, 2  ;;  %v161_v53 = vrot.slane %v160_v51, 4  ;;  %v228_v55 = vmul.f32 %v294_v47, %v227_v50  ;;  %v231_v57 = vmul.f32 %v227_v50, %v217_v46 }
  0x34   :  { %v88_v58 = vadd.f32 %v87_v52, %v86_v48  ;;  %v162_v59 = vadd.f32 %v161_v53, %v160_v51  ;;  %v493_v60 = vsub.f32 %v223_v54, %v228_v55  ;;  %v495_v61 = vadd.f32 %v231_v57, %v230_v56 }
  0x36   :  { %v89_v62 = vrot.slane %v88_v58, 1  ;;  %v163_v63 = vrot.slane %v162_v59, 2  ;;  %v233_v0 = vmul.f32 %v493_v60, %v493_v60  ;;  %v234_v43 = vmul.f32 %v495_v61, %v495_v61 }
  0x38   :  { %v90_v1 = vadd.f32 %v89_v62, %v88_v58  ;;  %v164_v2 = vadd.f32 %v163_v63, %v162_v59  ;;  %v235_v7 = vadd.f32 %v234_v43, %v233_v0 }
  0x3a   :  { %297 = vrsqrt.f32 %v90_v1  ;;  %v165_v8 = vrot.slane %v164_v2, 1  ;;  %v237_v9 = vsel %vm236_vm1, %v235_v7, 0.0  ;;  %vm93_vm2 = vcmp.eq.f32.partialorder %v90_v1, inf }
  0x3b   :  { %v238_v10 = vrot.slane %v237_v9, 4  ;;  %v96_v14 = vand.u32 2147483648, %v90_v1  ;;  %vm95_vm3 = vcmp.eq.f32.partialorder %v90_v1, 0.0 }
  0x3c   :  { %v166_v11 = vadd.f32 %v165_v8, %v164_v2 }
  0x3d   :  { %v239_v12 = vadd.f32 %v238_v10, %v237_v9 }
  0x3e   :  { %299 = vrsqrt.f32 %v166_v11  ;;  %vm169_vm4 = vcmp.eq.f32.partialorder %v166_v11, inf  ;;  %v172_v23 = vand.u32 2147483648, %v166_v11  ;;  %vm171_vm5 = vcmp.eq.f32.partialorder %v166_v11, 0.0 }
  0x3f   :  { %v240_v3 = vrot.slane %v239_v12, 2 }
  0x41   :  { %v241_v13 = vadd.f32 %v240_v3, %v239_v12 }
  0x43   :  { %v242_v15 = vrot.slane %v241_v13, 1 }
  0x44   :  { %v298_v4 = vpop.eup %297 }
  0x45   :  { %v92_v16 = vmul.f32 %v298_v4, %v90_v1  ;;  %v243_v17 = vadd.f32 %v242_v15, %v241_v13 }
  0x47   :  { %v94_v18 = vsel %vm93_vm2, %v90_v1, %v92_v16  ;;  %301 = vrsqrt.f32 %v243_v17  ;;  %vm246_vm6 = vcmp.eq.f32.partialorder %v243_v17, inf  ;;  %v249_v28 = vand.u32 2147483648, %v243_v17 }
  0x48   :  { %v97_v19 = vsel %vm95_vm3, %v96_v14, %v94_v18  ;;  %v300_v22 = vpop.eup %299  ;;  %vm248_vm8 = vcmp.eq.f32.partialorder %v243_v17, 0.0 }
  0x49   :  { %303 = vrsqrt.f32 %v97_v19  ;;  %v168_v24 = vmul.f32 %v300_v22, %v166_v11  ;;  %vm100_vm7 = vcmp.eq.f32.partialorder %v97_v19, inf  ;;  %v103_v29 = vand.u32 2147483648, %v97_v19 }
  0x4a   :  { %vm102_vm9 = vcmp.eq.f32.partialorder %v97_v19, 0.0 }
  0x4b   :  { %v170_v25 = vsel %vm169_vm4, %v166_v11, %v168_v24 }
  0x4c   :  { %v173_v26 = vsel %vm171_vm5, %v172_v23, %v170_v25 }
  0x4d   :  { %305 = vrsqrt.f32 %v173_v26  ;;  %vm176_vm10 = vcmp.eq.f32.partialorder %v173_v26, inf  ;;  %v179_v39 = vand.u32 2147483648, %v173_v26  ;;  %vm178_vm11 = vcmp.eq.f32.partialorder %v173_v26, 0.0 }
  0x51   :  { %v302_v27 = vpop.eup %301 }
  0x52   :  { %v245_v6 = vmul.f32 %v302_v27, %v243_v17 }
  0x53   :  { %v304_v5 = vpop.eup %303 }
  0x54   :  { %v99_v30 = vmul.f32 %v304_v5, %v97_v19  ;;  %v247_v31 = vsel %vm246_vm6, %v243_v17, %v245_v6 }
  0x55   :  { %v250_v35 = vsel %vm248_vm8, %v249_v28, %v247_v31 }
  0x56   :  { %v101_v32 = vsel %vm100_vm7, %v97_v19, %v99_v30  ;;  %307 = vrsqrt.f32 %v250_v35  ;;  %vm253_vm12 = vcmp.eq.f32.partialorder %v250_v35, inf  ;;  %v256_v46 = vand.u32 2147483648, %v250_v35 }
  0x57   :  { %v104_v36 = vsel %vm102_vm9, %v103_v29, %v101_v32  ;;  %v306_v37 = vpop.eup %305  ;;  %vm255_vm13 = vcmp.eq.f32.partialorder %v250_v35, 0.0 }
  0x58   :  { %v105_v38 = vadd.f32 0.001, %v104_v36  ;;  %v175_v40 = vmul.f32 %v306_v37, %v173_v26 }
  0x5a   :  { %309 = vrcp.f32 %v105_v38  ;;  %v177_v41 = vsel %vm176_vm10, %v173_v26, %v175_v40 }
  0x5b   :  { %v180_v42 = vsel %vm178_vm11, %v179_v39, %v177_v41 }
  0x5c   :  { %v181_v44 = vadd.f32 0.001, %v180_v42 }
  0x5e   :  { %311 = vrcp.f32 %v181_v44 }
  0x60   :  { %v308_v45 = vpop.eup %307 }
  0x61   :  { %v252_v47 = vmul.f32 %v308_v45, %v250_v35 }
  0x63   :  { %v254_v49 = vsel %vm253_vm12, %v250_v35, %v252_v47 }
  0x64   :  { %v310_v48 = vpop.eup %309  ;;  %v257_v52 = vsel %vm255_vm13, %v256_v46, %v254_v49 }
  0x65   :  { %v107_v50 = vmul.f32 %v310_v48, %v464_v20  ;;  %v109_v51 = vmul.f32 %v310_v48, %v466_v21  ;;  %v258_v53 = vadd.f32 0.001, %v257_v52 }
  0x67   :  { %108 = vst [vmem:[%s527_s2 + $0x2] sm:$0x7] %v107_v50  ;;  %279 = vst [vmem:[%s527_s2 + $0x12] sm:$0x7] %v109_v51  ;;  %313 = vrcp.f32 %v258_v53 }
  0x68   :  { %v312_v54 = vpop.eup %311 }
  0x69   :  { %v183_v55 = vmul.f32 %v312_v54, %v474_v33  ;;  %v185_v56 = vmul.f32 %v312_v54, %v476_v34 }
  0x6b   :  { %184 = vst [vmem:[%s527_s2 + $0x5] sm:$0x7] %v183_v55  ;;  %287 = vst [vmem:[%s527_s2 + $0x15] sm:$0x7] %v185_v56 }
  0x71   :  { %v314_v20 = vpop.eup %313 }
  0x72   :  { %v260_v21 = vmul.f32 %v314_v20, %v493_v60  ;;  %v262_v57 = vmul.f32 %v314_v20, %v495_v61 }
  0x74   :  { %261 = vst [vmem:[%s527_s2 + $0x8] sm:$0x1f] %v260_v21  ;;  %295 = vst [vmem:[%s527_s2 + $0x18] sm:$0x1f] %v262_v57 }
  0x75   :  { %268 = vsyncpa [#allocation3], 1 }

</bundles_post_ra>
